<compile_context>
chip_gen: v7x
topology: tpu7x:2x2x1
jax: 0.10.0
libtpu: 0.0.40
codegen_flags: <defaults>
</compile_context>

<pallas_src>
import functools

import jax
import jax.numpy as jnp
from jax import lax
from jax.experimental import pallas as pl
from jax.experimental.pallas import tpu as pltpu


def bow_kernel(data_ref, length_ref, emb_ref, wt_ref, b_ref, out_ref,
               acc_ref, counts_ref, *, seq_unroll):
    # data_ref:   (B_TILE, L)        int32 token ids (padding token id == 0)
    # length_ref: (B_TILE, 1)        int32 non-padded lengths (1 on batch-padding rows)
    # emb_ref:    (V_TILE, E_pad)    f32 embedding chunk (row 0 of the real table is zero)
    # wt_ref:     (E_pad, C_pad)     f32 pre-transposed classifier weight
    # b_ref:      (1, C_pad)         f32 bias
    # out_ref:    (B_TILE, C_pad)    f32 logits (lane-dense, sliced outside)
    # acc_ref:    (B_TILE, E_pad)    f32 VMEM scratch accumulator for the bag sum
    # counts_ref: (B_TILE, V_TILE)   f32 VMEM scratch for per-chunk token counts
    j = pl.program_id(1)                       # vocab-chunk (reduction) axis

    @pl.when(j == 0)
    def _init():
        acc_ref[...] = jnp.zeros_like(acc_ref)

    b_tile, seq_len = data_ref.shape
    v_tile = emb_ref.shape[0]
    v_base = j * v_tile

    # (1, v_tile) iota -> 1/b_tile-th of the vregs of a full (b_tile, v_tile) tile; the
    # compare below broadcasts it against the (b_tile, 1) token column.
    vocab_ids = v_base + lax.broadcasted_iota(jnp.int32, (1, v_tile), 1)

    # counts[b, v] = #{l : data[b, l] == v_base + v}. Accumulated into VMEM scratch so large
    # batch/vocab tiles never force the (b_tile, v_tile) accumulator through the 64-vreg file;
    # the per-token VMEM read-modify-write is deliberate and schedulable. Unroll is capped.
    counts_ref[...] = jnp.zeros_like(counts_ref)

    def body(l, carry):
        tok = data_ref[:, pl.ds(l, 1)]                         # (b_tile, 1) int32
        counts_ref[...] += (tok == vocab_ids).astype(jnp.float32)
        return carry

    lax.fori_loop(0, seq_len, body, 0, unroll=seq_unroll)

    # Partial bag-of-words embedding sum for this vocab chunk (MXU matmul).
    # padding_idx=0 is respected because row 0 of the embedding table is zero.
    acc_ref[...] += jnp.dot(counts_ref[...], emb_ref[...],
                            preferred_element_type=jnp.float32)

    @pl.when(j == pl.num_programs(1) - 1)
    def _finalize():
        # Classifier matmul first, then the per-row 1/length scale (commutes past the matmul,
        # so we scale (B, C) instead of (B, E)). Exact reciprocal keeps full f32 accuracy.
        logits = jnp.dot(acc_ref[...], wt_ref[...], preferred_element_type=jnp.float32)
        inv_len = 1.0 / length_ref[...].astype(jnp.float32)     # (b_tile, 1)
        out_ref[...] = logits * inv_len + b_ref[...]


def _round_up(x, m):
    return ((x + m - 1) // m) * m


def _vmem_capacity_bytes():
    """Generation-aware VMEM capacity (128 MiB on v5e/v6e, 64 MiB per TC on v7x)."""
    try:
        return int(pltpu.get_tpu_info().vmem_capacity_bytes)
    except Exception:
        return 64 * 1024 * 1024   # conservative fallback (v7x per-TensorCore)


def bag_of_words_forward(data, length, emb_table, w, b):
    """data: (B, L) int token ids; length: (B,) int; emb_table: (V, E); w: (C, E); b: (C,)."""
    B, L = data.shape
    V, E = emb_table.shape
    C = w.shape[0]

    e_pad = _round_up(E, 128)
    c_pad = _round_up(C, 128)

    # ---- batch tiling: keep the whole batch resident (table streams once) up to 256 rows;
    # above that, 256-row tiles give a full MXU M-dim and >=2 parallel tiles for v7x megacore.
    b_pad = _round_up(B, 8)
    if b_pad <= 256:
        b_tile = b_pad
    else:
        b_tile = 256
        b_pad = _round_up(b_pad, b_tile)

    # ---- generation-aware VMEM budget and vocab tile sizing ----------------------------------
    vmem_cap = _vmem_capacity_bytes()
    vmem_limit = max(32 << 20, min((vmem_cap * 3) // 4, 100 << 20))   # ~48 MiB v7x, ~96 MiB v5e/v6e

    fixed_bytes = 4 * (2 * b_tile * L          # token ids (double-buffered, int32)
                       + 2 * b_tile            # lengths
                       + 2 * e_pad * c_pad     # W^T (index-constant, still double-buffered)
                       + 2 * c_pad             # bias
                       + 2 * b_tile * c_pad    # output block
                       + b_tile * e_pad)       # acc scratch
    headroom = 4 << 20                         # Mosaic internal scratch / slack
    per_v_bytes = 4 * (2 * e_pad + b_tile)     # 2 emb buffers + counts scratch, per vocab row
    avail = max(vmem_limit - fixed_bytes - headroom, per_v_bytes * 128)
    v_tile = max(128, (avail // per_v_bytes) // 128 * 128)
    v_tile = min(v_tile, 8192, _round_up(V, 128))
    v_pad = _round_up(V, v_tile)

    # ---- (8,128)-aligned, lane-dense padded operands (padding is zeros -> contributes nothing)
    data_p = jnp.zeros((b_pad, L), jnp.int32).at[:B].set(data.astype(jnp.int32))
    length_p = jnp.ones((b_pad, 1), jnp.int32).at[:B, 0].set(length.astype(jnp.int32))
    emb_p = jnp.zeros((v_pad, e_pad), jnp.float32).at[:V, :E].set(emb_table.astype(jnp.float32))
    # nn.Embedding(padding_idx=0) keeps row 0 at zero; enforce it so padding tokens and
    # batch-padding rows contribute exactly nothing.
    emb_p = emb_p.at[0, :].set(0.0)
    # pre-transpose W once in the wrapper (free layout plumbing, no in-kernel XLU transpose)
    wt_p = jnp.zeros((e_pad, c_pad), jnp.float32).at[:E, :C].set(w.astype(jnp.float32).T)
    b_p = jnp.zeros((1, c_pad), jnp.float32).at[0, :C].set(b.astype(jnp.float32))

    grid = (b_pad // b_tile, v_pad // v_tile)   # (parallel batch tiles, vocab reduction)
    kernel = functools.partial(bow_kernel, seq_unroll=max(1, min(int(L), 8)))

    out_p = pl.pallas_call(
        kernel,
        out_shape=jax.ShapeDtypeStruct((b_pad, c_pad), jnp.float32),
        grid_spec=pltpu.PrefetchScalarGridSpec(
            num_scalar_prefetch=0,
            grid=grid,
            in_specs=[
                pl.BlockSpec((b_tile, L), lambda i, j: (i, 0)),       # token ids
                pl.BlockSpec((b_tile, 1), lambda i, j: (i, 0)),       # lengths
                pl.BlockSpec((v_tile, e_pad), lambda i, j: (j, 0)),   # embedding chunk
                pl.BlockSpec((e_pad, c_pad), lambda i, j: (0, 0)),    # W^T (resident)
                pl.BlockSpec((1, c_pad), lambda i, j: (0, 0)),        # bias (resident)
            ],
            out_specs=pl.BlockSpec((b_tile, c_pad), lambda i, j: (i, 0)),
            scratch_shapes=[
                pltpu.VMEM((b_tile, e_pad), jnp.float32),   # bag-sum accumulator
                pltpu.VMEM((b_tile, v_tile), jnp.float32),  # counts accumulator
            ],
        ),
        compiler_params=pltpu.CompilerParams(
            dimension_semantics=("parallel", "arbitrary"),
            vmem_limit_bytes=int(vmem_limit),
        ),
    )(data_p, length_p, emb_p, wt_p, b_p)

    return out_p[:B, :C]


def reference_forward(data, length, emb_table, w, b):
    out = emb_table[data]                       # (B, L, E)
    out = jnp.sum(out, axis=1)                  # (B, E)
    out = out / length.reshape(-1, 1).astype(jnp.float32)
    return out @ w.T + b


if __name__ == "__main__":
    # Small, deterministic setup consistent with the module's __init__.
    vocab_size = 32
    emb_dim = 32
    num_classes = 20
    batch = 2
    max_len = 8

    key = jax.random.PRNGKey(0)
    k_emb, k_w, k_b, k_data, k_len = jax.random.split(key, 5)

    # nn.Embedding(vocab_size, emb_dim, padding_idx=0): N(0,1) init, row 0 zeroed.
    emb_table = jax.random.normal(k_emb, (vocab_size, emb_dim), dtype=jnp.float32)
    emb_table = emb_table.at[0].set(0.0)

    # nn.Linear(emb_dim, 20): uniform(-1/sqrt(fan_in), 1/sqrt(fan_in)) init.
    bound = 1.0 / (emb_dim ** 0.5)
    w = jax.random.uniform(k_w, (num_classes, emb_dim), jnp.float32, -bound, bound)
    b = jax.random.uniform(k_b, (num_classes,), jnp.float32, -bound, bound)

    # data: padded token-index matrix; length: non-padded lengths per row.
    length = jax.random.randint(k_len, (batch,), 3, max_len + 1)       # in [3, max_len]
    raw = jax.random.randint(k_data, (batch, max_len), 1, vocab_size)  # nonzero tokens
    pos = jnp.arange(max_len)[None, :]
    data = jnp.where(pos < length[:, None], raw, 0).astype(jnp.int32)  # pad with idx 0

    out = bag_of_words_forward(data, length, emb_table, w, b)
    jax.block_until_ready(out)

    ref = reference_forward(data, length, emb_table, w, b)
    assert out.shape == (batch, num_classes)
    assert jnp.allclose(out, ref, atol=1e-4, rtol=1e-4)

    print("KERNEL_OK")
</pallas_src>

<mosaic_0001>
module attributes {stable_mosaic.version = 11 : i64} {
  func.func @bow_kernel(%arg0: i32, %arg1: i32, %arg2: memref<8x8xi32, #tpu.memory_space<vmem>>, %arg3: memref<8x1xi32, #tpu.memory_space<vmem>>, %arg4: memref<128x128xf32, #tpu.memory_space<vmem>>, %arg5: memref<128x128xf32, #tpu.memory_space<vmem>>, %arg6: memref<1x128xf32, #tpu.memory_space<vmem>>, %arg7: memref<8x128xf32, #tpu.memory_space<vmem>>, %arg8: memref<8x128xf32, #tpu.memory_space<vmem>>, %arg9: memref<8x128xf32, #tpu.memory_space<vmem>>) attributes {dimension_semantics = [#tpu.dimension_semantics<parallel>, #tpu.dimension_semantics<arbitrary>], iteration_bounds = array<i64: 1, 1>, scalar_prefetch = 0 : i64, scratch_operands = 2 : i64, tpu.core_type = #tpu.core_type<tc>, window_params = [{transform_indices = @transform_0, window_bounds = array<i64: 8, 8>}, {transform_indices = @transform_1, window_bounds = array<i64: 8, 1>}, {transform_indices = @transform_2, window_bounds = array<i64: 128, 128>}, {pipeline_mode = #tpu.pipeline_mode<synchronous>, transform_indices = @transform_3, window_bounds = array<i64: 128, 128>}, {pipeline_mode = #tpu.pipeline_mode<synchronous>, transform_indices = @transform_4, window_bounds = array<i64: 1, 128>}, {transform_indices = @transform_5, window_bounds = array<i64: 8, 128>}]} {
    %c0_i32 = arith.constant 0 : i32
    %0 = arith.cmpi eq, %arg1, %c0_i32 : i32
    %1 = arith.extui %0 : i1 to i32
    %c0_i32_0 = arith.constant 0 : i32
    %2 = arith.cmpi ne, %1, %c0_i32_0 : i32
    scf.if %2 {
      %cst_54 = arith.constant 0.000000e+00 : f32
      %98 = vector.broadcast %cst_54 : f32 to vector<8x128xf32>
      %c0_55 = arith.constant 0 : index
      %c0_56 = arith.constant 0 : index
      %99 = vector.load %arg8[%c0_55, %c0_56] : memref<8x128xf32, #tpu.memory_space<vmem>>, vector<8x128xf32>
      tpu.vector_store %arg8[%c0_55, %c0_56], %98 {strides = array<i32>} : memref<8x128xf32, #tpu.memory_space<vmem>>, vector<8x128xf32>,
    } else {
    }
    %c128_i32 = arith.constant 128 : i32
    %3 = arith.muli %arg1, %c128_i32 : i32
    %4 = tpu.iota {dimensions = array<i32: 1>} : vector<1x128xi32>
    %5 = vector.broadcast %3 : i32 to vector<1x128xi32>
    %6 = arith.addi %5, %4 : vector<1x128xi32>
    %cst = arith.constant 0.000000e+00 : f32
    %7 = vector.broadcast %cst : f32 to vector<8x128xf32>
    %c0 = arith.constant 0 : index
    %c0_1 = arith.constant 0 : index
    %8 = vector.load %arg9[%c0, %c0_1] : memref<8x128xf32, #tpu.memory_space<vmem>>, vector<8x128xf32>
    tpu.vector_store %arg9[%c0, %c0_1], %7 {strides = array<i32>} : memref<8x128xf32, #tpu.memory_space<vmem>>, vector<8x128xf32>,
    %c0_i32_2 = arith.constant 0 : i32
    %c0_3 = arith.constant 0 : index
    %9 = arith.index_cast %c0_i32_2 : i32 to index
    %10 = vector.load %arg2[%c0_3, %9] : memref<8x8xi32, #tpu.memory_space<vmem>>, vector<8x1xi32>
    %c0_4 = arith.constant 0 : index
    %c0_5 = arith.constant 0 : index
    %11 = vector.load %arg9[%c0_4, %c0_5] : memref<8x128xf32, #tpu.memory_space<vmem>>, vector<8x128xf32>
    %12 = vector.broadcast %10 : vector<8x1xi32> to vector<8x128xi32>
    %13 = vector.broadcast %6 : vector<1x128xi32> to vector<8x128xi32>
    %14 = arith.cmpi eq, %12, %13 : vector<8x128xi32>
    %15 = arith.extui %14 : vector<8x128xi1> to vector<8x128xi32>
    %16 = arith.sitofp %15 : vector<8x128xi32> to vector<8x128xf32>
    %17 = arith.addf %11, %16 : vector<8x128xf32>
    %c0_6 = arith.constant 0 : index
    %c0_7 = arith.constant 0 : index
    %18 = vector.load %arg9[%c0_6, %c0_7] : memref<8x128xf32, #tpu.memory_space<vmem>>, vector<8x128xf32>
    tpu.vector_store %arg9[%c0_6, %c0_7], %17 {strides = array<i32>} : memref<8x128xf32, #tpu.memory_space<vmem>>, vector<8x128xf32>,
    %c1_i32 = arith.constant 1 : i32
    %c0_8 = arith.constant 0 : index
    %19 = arith.index_cast %c1_i32 : i32 to index
    %20 = vector.load %arg2[%c0_8, %19] : memref<8x8xi32, #tpu.memory_space<vmem>>, vector<8x1xi32>
    %c0_9 = arith.constant 0 : index
    %c0_10 = arith.constant 0 : index
    %21 = vector.load %arg9[%c0_9, %c0_10] : memref<8x128xf32, #tpu.memory_space<vmem>>, vector<8x128xf32>
    %22 = vector.broadcast %20 : vector<8x1xi32> to vector<8x128xi32>
    %23 = vector.broadcast %6 : vector<1x128xi32> to vector<8x128xi32>
    %24 = arith.cmpi eq, %22, %23 : vector<8x128xi32>
    %25 = arith.extui %24 : vector<8x128xi1> to vector<8x128xi32>
    %26 = arith.sitofp %25 : vector<8x128xi32> to vector<8x128xf32>
    %27 = arith.addf %21, %26 : vector<8x128xf32>
    %c0_11 = arith.constant 0 : index
    %c0_12 = arith.constant 0 : index
    %28 = vector.load %arg9[%c0_11, %c0_12] : memref<8x128xf32, #tpu.memory_space<vmem>>, vector<8x128xf32>
    tpu.vector_store %arg9[%c0_11, %c0_12], %27 {strides = array<i32>} : memref<8x128xf32, #tpu.memory_space<vmem>>, vector<8x128xf32>,
    %c2_i32 = arith.constant 2 : i32
    %c0_13 = arith.constant 0 : index
    %29 = arith.index_cast %c2_i32 : i32 to index
    %30 = vector.load %arg2[%c0_13, %29] : memref<8x8xi32, #tpu.memory_space<vmem>>, vector<8x1xi32>
    %c0_14 = arith.constant 0 : index
    %c0_15 = arith.constant 0 : index
    %31 = vector.load %arg9[%c0_14, %c0_15] : memref<8x128xf32, #tpu.memory_space<vmem>>, vector<8x128xf32>
    %32 = vector.broadcast %30 : vector<8x1xi32> to vector<8x128xi32>
    %33 = vector.broadcast %6 : vector<1x128xi32> to vector<8x128xi32>
    %34 = arith.cmpi eq, %32, %33 : vector<8x128xi32>
    %35 = arith.extui %34 : vector<8x128xi1> to vector<8x128xi32>
    %36 = arith.sitofp %35 : vector<8x128xi32> to vector<8x128xf32>
    %37 = arith.addf %31, %36 : vector<8x128xf32>
    %c0_16 = arith.constant 0 : index
    %c0_17 = arith.constant 0 : index
    %38 = vector.load %arg9[%c0_16, %c0_17] : memref<8x128xf32, #tpu.memory_space<vmem>>, vector<8x128xf32>
    tpu.vector_store %arg9[%c0_16, %c0_17], %37 {strides = array<i32>} : memref<8x128xf32, #tpu.memory_space<vmem>>, vector<8x128xf32>,
    %c3_i32 = arith.constant 3 : i32
    %c0_18 = arith.constant 0 : index
    %39 = arith.index_cast %c3_i32 : i32 to index
    %40 = vector.load %arg2[%c0_18, %39] : memref<8x8xi32, #tpu.memory_space<vmem>>, vector<8x1xi32>
    %c0_19 = arith.constant 0 : index
    %c0_20 = arith.constant 0 : index
    %41 = vector.load %arg9[%c0_19, %c0_20] : memref<8x128xf32, #tpu.memory_space<vmem>>, vector<8x128xf32>
    %42 = vector.broadcast %40 : vector<8x1xi32> to vector<8x128xi32>
    %43 = vector.broadcast %6 : vector<1x128xi32> to vector<8x128xi32>
    %44 = arith.cmpi eq, %42, %43 : vector<8x128xi32>
    %45 = arith.extui %44 : vector<8x128xi1> to vector<8x128xi32>
    %46 = arith.sitofp %45 : vector<8x128xi32> to vector<8x128xf32>
    %47 = arith.addf %41, %46 : vector<8x128xf32>
    %c0_21 = arith.constant 0 : index
    %c0_22 = arith.constant 0 : index
    %48 = vector.load %arg9[%c0_21, %c0_22] : memref<8x128xf32, #tpu.memory_space<vmem>>, vector<8x128xf32>
    tpu.vector_store %arg9[%c0_21, %c0_22], %47 {strides = array<i32>} : memref<8x128xf32, #tpu.memory_space<vmem>>, vector<8x128xf32>,
    %c4_i32 = arith.constant 4 : i32
    %c0_23 = arith.constant 0 : index
    %49 = arith.index_cast %c4_i32 : i32 to index
    %50 = vector.load %arg2[%c0_23, %49] : memref<8x8xi32, #tpu.memory_space<vmem>>, vector<8x1xi32>
    %c0_24 = arith.constant 0 : index
    %c0_25 = arith.constant 0 : index
    %51 = vector.load %arg9[%c0_24, %c0_25] : memref<8x128xf32, #tpu.memory_space<vmem>>, vector<8x128xf32>
    %52 = vector.broadcast %50 : vector<8x1xi32> to vector<8x128xi32>
    %53 = vector.broadcast %6 : vector<1x128xi32> to vector<8x128xi32>
    %54 = arith.cmpi eq, %52, %53 : vector<8x128xi32>
    %55 = arith.extui %54 : vector<8x128xi1> to vector<8x128xi32>
    %56 = arith.sitofp %55 : vector<8x128xi32> to vector<8x128xf32>
    %57 = arith.addf %51, %56 : vector<8x128xf32>
    %c0_26 = arith.constant 0 : index
    %c0_27 = arith.constant 0 : index
    %58 = vector.load %arg9[%c0_26, %c0_27] : memref<8x128xf32, #tpu.memory_space<vmem>>, vector<8x128xf32>
    tpu.vector_store %arg9[%c0_26, %c0_27], %57 {strides = array<i32>} : memref<8x128xf32, #tpu.memory_space<vmem>>, vector<8x128xf32>,
    %c5_i32 = arith.constant 5 : i32
    %c0_28 = arith.constant 0 : index
    %59 = arith.index_cast %c5_i32 : i32 to index
    %60 = vector.load %arg2[%c0_28, %59] : memref<8x8xi32, #tpu.memory_space<vmem>>, vector<8x1xi32>
    %c0_29 = arith.constant 0 : index
    %c0_30 = arith.constant 0 : index
    %61 = vector.load %arg9[%c0_29, %c0_30] : memref<8x128xf32, #tpu.memory_space<vmem>>, vector<8x128xf32>
    %62 = vector.broadcast %60 : vector<8x1xi32> to vector<8x128xi32>
    %63 = vector.broadcast %6 : vector<1x128xi32> to vector<8x128xi32>
    %64 = arith.cmpi eq, %62, %63 : vector<8x128xi32>
    %65 = arith.extui %64 : vector<8x128xi1> to vector<8x128xi32>
    %66 = arith.sitofp %65 : vector<8x128xi32> to vector<8x128xf32>
    %67 = arith.addf %61, %66 : vector<8x128xf32>
    %c0_31 = arith.constant 0 : index
    %c0_32 = arith.constant 0 : index
    %68 = vector.load %arg9[%c0_31, %c0_32] : memref<8x128xf32, #tpu.memory_space<vmem>>, vector<8x128xf32>
    tpu.vector_store %arg9[%c0_31, %c0_32], %67 {strides = array<i32>} : memref<8x128xf32, #tpu.memory_space<vmem>>, vector<8x128xf32>,
    %c6_i32 = arith.constant 6 : i32
    %c0_33 = arith.constant 0 : index
    %69 = arith.index_cast %c6_i32 : i32 to index
    %70 = vector.load %arg2[%c0_33, %69] : memref<8x8xi32, #tpu.memory_space<vmem>>, vector<8x1xi32>
    %c0_34 = arith.constant 0 : index
    %c0_35 = arith.constant 0 : index
    %71 = vector.load %arg9[%c0_34, %c0_35] : memref<8x128xf32, #tpu.memory_space<vmem>>, vector<8x128xf32>
    %72 = vector.broadcast %70 : vector<8x1xi32> to vector<8x128xi32>
    %73 = vector.broadcast %6 : vector<1x128xi32> to vector<8x128xi32>
    %74 = arith.cmpi eq, %72, %73 : vector<8x128xi32>
    %75 = arith.extui %74 : vector<8x128xi1> to vector<8x128xi32>
    %76 = arith.sitofp %75 : vector<8x128xi32> to vector<8x128xf32>
    %77 = arith.addf %71, %76 : vector<8x128xf32>
    %c0_36 = arith.constant 0 : index
    %c0_37 = arith.constant 0 : index
    %78 = vector.load %arg9[%c0_36, %c0_37] : memref<8x128xf32, #tpu.memory_space<vmem>>, vector<8x128xf32>
    tpu.vector_store %arg9[%c0_36, %c0_37], %77 {strides = array<i32>} : memref<8x128xf32, #tpu.memory_space<vmem>>, vector<8x128xf32>,
    %c7_i32 = arith.constant 7 : i32
    %c0_38 = arith.constant 0 : index
    %79 = arith.index_cast %c7_i32 : i32 to index
    %80 = vector.load %arg2[%c0_38, %79] : memref<8x8xi32, #tpu.memory_space<vmem>>, vector<8x1xi32>
    %c0_39 = arith.constant 0 : index
    %c0_40 = arith.constant 0 : index
    %81 = vector.load %arg9[%c0_39, %c0_40] : memref<8x128xf32, #tpu.memory_space<vmem>>, vector<8x128xf32>
    %82 = vector.broadcast %80 : vector<8x1xi32> to vector<8x128xi32>
    %83 = vector.broadcast %6 : vector<1x128xi32> to vector<8x128xi32>
    %84 = arith.cmpi eq, %82, %83 : vector<8x128xi32>
    %85 = arith.extui %84 : vector<8x128xi1> to vector<8x128xi32>
    %86 = arith.sitofp %85 : vector<8x128xi32> to vector<8x128xf32>
    %87 = arith.addf %81, %86 : vector<8x128xf32>
    %c0_41 = arith.constant 0 : index
    %c0_42 = arith.constant 0 : index
    %88 = vector.load %arg9[%c0_41, %c0_42] : memref<8x128xf32, #tpu.memory_space<vmem>>, vector<8x128xf32>
    tpu.vector_store %arg9[%c0_41, %c0_42], %87 {strides = array<i32>} : memref<8x128xf32, #tpu.memory_space<vmem>>, vector<8x128xf32>,
    %c8_i32 = arith.constant 8 : i32
    %c0_43 = arith.constant 0 : index
    %c0_44 = arith.constant 0 : index
    %89 = vector.load %arg8[%c0_43, %c0_44] : memref<8x128xf32, #tpu.memory_space<vmem>>, vector<8x128xf32>
    %c0_45 = arith.constant 0 : index
    %c0_46 = arith.constant 0 : index
    %90 = vector.load %arg9[%c0_45, %c0_46] : memref<8x128xf32, #tpu.memory_space<vmem>>, vector<8x128xf32>
    %c0_47 = arith.constant 0 : index
    %c0_48 = arith.constant 0 : index
    %91 = vector.load %arg4[%c0_47, %c0_48] : memref<128x128xf32, #tpu.memory_space<vmem>>, vector<128x128xf32>
    %cst_49 = arith.constant dense<0.000000e+00> : vector<8x128xf32>
    %92 = tpu.matmul %90, %91, %cst_49 {dimension_numbers = #tpu.dot_dimension_numbers<[1], [0], [0], [1], [0, 0, 1, 1], [], []>} : vector<8x128xf32>, vector<128x128xf32>, vector<8x128xf32> -> vector<8x128xf32>
    %93 = arith.addf %89, %92 : vector<8x128xf32>
    %c0_50 = arith.constant 0 : index
    %c0_51 = arith.constant 0 : index
    %94 = vector.load %arg8[%c0_50, %c0_51] : memref<8x128xf32, #tpu.memory_space<vmem>>, vector<8x128xf32>
    tpu.vector_store %arg8[%c0_50, %c0_51], %93 {strides = array<i32>} : memref<8x128xf32, #tpu.memory_space<vmem>>, vector<8x128xf32>,
    %c0_i32_52 = arith.constant 0 : i32
    %95 = arith.cmpi eq, %arg1, %c0_i32_52 : i32
    %96 = arith.extui %95 : i1 to i32
    %c0_i32_53 = arith.constant 0 : i32
    %97 = arith.cmpi ne, %96, %c0_i32_53 : i32
    scf.if %97 {
      %c0_54 = arith.constant 0 : index
      %c0_55 = arith.constant 0 : index
      %98 = vector.load %arg8[%c0_54, %c0_55] : memref<8x128xf32, #tpu.memory_space<vmem>>, vector<8x128xf32>
      %c0_56 = arith.constant 0 : index
      %c0_57 = arith.constant 0 : index
      %99 = vector.load %arg5[%c0_56, %c0_57] : memref<128x128xf32, #tpu.memory_space<vmem>>, vector<128x128xf32>
      %cst_58 = arith.constant dense<0.000000e+00> : vector<8x128xf32>
      %100 = tpu.matmul %98, %99, %cst_58 {dimension_numbers = #tpu.dot_dimension_numbers<[1], [0], [0], [1], [0, 0, 1, 1], [], []>} : vector<8x128xf32>, vector<128x128xf32>, vector<8x128xf32> -> vector<8x128xf32>
      %c0_59 = arith.constant 0 : index
      %c0_60 = arith.constant 0 : index
      %101 = vector.load %arg3[%c0_59, %c0_60] : memref<8x1xi32, #tpu.memory_space<vmem>>, vector<8x1xi32>
      %102 = arith.sitofp %101 : vector<8x1xi32> to vector<8x1xf32>
      %cst_61 = arith.constant 1.000000e+00 : f32
      %103 = vector.broadcast %cst_61 : f32 to vector<8x1xf32>
      %104 = arith.divf %103, %102 : vector<8x1xf32>
      %105 = vector.broadcast %104 : vector<8x1xf32> to vector<8x128xf32>
      %106 = arith.mulf %100, %105 : vector<8x128xf32>
      %c0_62 = arith.constant 0 : index
      %c0_63 = arith.constant 0 : index
      %107 = vector.load %arg6[%c0_62, %c0_63] : memref<1x128xf32, #tpu.memory_space<vmem>>, vector<1x128xf32>
      %108 = vector.broadcast %107 : vector<1x128xf32> to vector<8x128xf32>
      %109 = arith.addf %106, %108 : vector<8x128xf32>
      %c0_64 = arith.constant 0 : index
      %c0_65 = arith.constant 0 : index
      %110 = vector.load %arg7[%c0_64, %c0_65] : memref<8x128xf32, #tpu.memory_space<vmem>>, vector<8x128xf32>
      tpu.vector_store %arg7[%c0_64, %c0_65], %109 {strides = array<i32>} : memref<8x128xf32, #tpu.memory_space<vmem>>, vector<8x128xf32>,
    } else {
    }
    return
  }
  func.func @transform_0(%arg0: i32, %arg1: i32) -> (i32, i32) {
    %c0_i32 = arith.constant 0 : i32
    %c0_i32_0 = arith.constant 0 : i32
    return %arg0, %c0_i32 : i32, i32
  }
  func.func @transform_1(%arg0: i32, %arg1: i32) -> (i32, i32) {
    %c0_i32 = arith.constant 0 : i32
    %c0_i32_0 = arith.constant 0 : i32
    return %arg0, %c0_i32 : i32, i32
  }
  func.func @transform_2(%arg0: i32, %arg1: i32) -> (i32, i32) {
    %c0_i32 = arith.constant 0 : i32
    %c0_i32_0 = arith.constant 0 : i32
    return %arg1, %c0_i32 : i32, i32
  }
  func.func @transform_3(%arg0: i32, %arg1: i32) -> (i32, i32) {
    %c0_i32 = arith.constant 0 : i32
    %c0_i32_0 = arith.constant 0 : i32
    %c0_i32_1 = arith.constant 0 : i32
    return %c0_i32, %c0_i32_0 : i32, i32
  }
  func.func @transform_4(%arg0: i32, %arg1: i32) -> (i32, i32) {
    %c0_i32 = arith.constant 0 : i32
    %c0_i32_0 = arith.constant 0 : i32
    %c0_i32_1 = arith.constant 0 : i32
    return %c0_i32, %c0_i32_0 : i32, i32
  }
  func.func @transform_5(%arg0: i32, %arg1: i32) -> (i32, i32) {
    %c0_i32 = arith.constant 0 : i32
    %c0_i32_0 = arith.constant 0 : i32
    return %arg0, %c0_i32 : i32, i32
  }
}

</mosaic_0001>

<bundles_post_ra>
// kernel: tpu_custom_call.1
= control target key start
LH: loop header
LB: loop body
LE: loop exit
PB: predicated region body
PF: predicated region fallthrough
CT: control target
= control target key end

     0   :  { %10 = vsyncpa [#allocation5], 0  ;;  %s732_s0 = inlined_call_operand.vmem [shape: s32[8,8], index: 0, kind: input, shape index: {}]   ;;  %s733_s1 = inlined_call_operand.vmem [shape: s32[8,1], index: 1, kind: input, shape index: {}]   ;;  %s734_s2 = inlined_call_operand.hbm [shape: f32[128,128], index: 2, kind: input, shape index: {}]   ;;  %s735_s3 = inlined_call_operand.hbm [shape: f32[128,128], index: 3, kind: input, shape index: {}]   ;;  %s736_s4 = inlined_call_operand.vmem [shape: f32[1,128], index: 4, kind: input, shape index: {}]   ;;  %s737_s5 = inlined_call_operand.hbm [shape: f32[8,128], index: 5, kind: output, shape index: {}]  }
   0x1   :  { %11 = vsyncpa [#allocation8], 0 }
   0x2   :  { %12 = vsyncpa [#allocation6], 0  ;;  %s615_s18 = smov [#allocation4]   ;;  %s543_s22 = scalar_lea.hbm %s734_s2, 2048 }
   0x3   :  { %s22_s19 = sshll.u32 %s615_s18, 4  ;;  %p544_p0 = scmp.ne.s32.totalorder %s734_s2, %s543_s22  ;;  %s23_s19 = int_to_ptr.vmem [resolvable:$true] %s22_s19 }
   0x4   :  { %p547_p1 = scmp.lt.u32.totalorder %s543_s22, %s734_s2 }
   0x6   :  { %p549_p2 = pnand %p547_p1, %p544_p0 }
   0x8   :  { %552 = shalt.err (!%p549_p2)
}
   0x9   :  { %s553_s27 = scalar_lea.vmem %s23_s19, 2048  ;;  %p558_p4 = scmp.lt.s32.totalorder %s23_s19, %s23_s19 }
   0xa   :  { %p554_p3 = scmp.ne.s32.totalorder %s23_s19, %s553_s27  ;;  %p559_p5 = scmp.lt.s32.totalorder %s553_s27, %s553_s27 }
   0xc   :  { %p560_p6 = por %p559_p5, %p558_p4 }
   0xe   :  { %p561_p7 = pnand %p560_p6, %p554_p3 }
  0x10   :  { %564 = shalt.err (!%p561_p7)
}
  0x11   :  { %s616_s28 = smov 128   ;;  %s617_s29 = smov 8  }
  0x12   :  { %28 = dma.hbm_to_vmem [thread:$0]  %s734_s2, 2048, %s23_s19, [#allocation5], %s616_s28, %s616_s28, %s617_s29  }
  0x13   :  { %s618_s7 = smov [#allocation7]   ;;  %s565_s11 = scalar_lea.hbm %s735_s3, 2048 }
  0x14   :  { %s34_s8 = sshll.u32 %s618_s7, 4  ;;  %p566_p8 = scmp.ne.s32.totalorder %s735_s3, %s565_s11  ;;  %s35_s8 = int_to_ptr.vmem [resolvable:$true] %s34_s8 }
  0x15   :  { %p569_p9 = scmp.lt.u32.totalorder %s565_s11, %s735_s3 }
  0x17   :  { %p571_p10 = pnand %p569_p9, %p566_p8 }
  0x19   :  { %574 = shalt.err (!%p571_p10)
}
  0x1a   :  { %s575_s16 = scalar_lea.vmem %s35_s8, 2048  ;;  %p580_p12 = scmp.lt.s32.totalorder %s35_s8, %s35_s8 }
  0x1b   :  { %p576_p11 = scmp.ne.s32.totalorder %s35_s8, %s575_s16  ;;  %p581_p13 = scmp.lt.s32.totalorder %s575_s16, %s575_s16 }
  0x1d   :  { %p582_p0 = por %p581_p13, %p580_p12 }
  0x1f   :  { %p583_p1 = pnand %p582_p0, %p576_p11 }
  0x21   :  { %586 = shalt.err (!%p583_p1)
}
  0x22   :  { %40 = dma.hbm_to_vmem [thread:$0]  %s735_s3, 2048, %s35_s8, [#allocation8], %s616_s28, %s616_s28, %s617_s29  }
  0x23   :  { %609 = dma.done.wait [#allocation5], 2048  }
  0x24   :  { %610 = vsyncadd [#allocation5], 4294965248 }
  0x25   :  { %611 = dma.done.wait [#allocation8], 2048  }
  0x26   :  { %612 = vsyncadd [#allocation8], 4294965248  ;;  %v619_v0 = vmov 2   ;;  %v620_v1 = vmov 0   ;;  %v621_v2 = vmov 0.0|0.0   ;;  %v80_v3 = vld [vmem:[%s732_s0] sm:$0xff]  ;;  %v55_v59 = vlaneseq }
  0x27   :  { %534 = vset.pattern.permute.xlu1 %v619_v0  ;;  %532 = vset.pattern.permute.xlu0 %v620_v1  ;;  %v142_v4 = vld [vmem:[#allocation4] sm:$0xff]  ;;  %v143_v5 = vld [vmem:[#allocation4 + $0x8] sm:$0xff]  ;;  %v144_v7 = vld [vmem:[#allocation4 + $0x10] sm:$0xff]  ;;  %v622_v10 = vmov 3   ;;  %v623_v11 = vmov 1   ;;  %v624_v17 = vmov 4  }
  0x28   :  { %468 = vmatprep.subr.bf16.mxu0 %v621_v2  ;;  %492 = vmatprep.subr.bf16.mxu1 %v621_v2  ;;  %v469_v6 = vpack.c.bf16 %v143_v5, %v142_v4  ;;  %v145_v8 = vld [vmem:[#allocation4 + $0x18] sm:$0xff]  ;;  %v146_v12 = vld [vmem:[#allocation4 + $0x20] sm:$0xff]  ;;  %v147_v13 = vld [vmem:[#allocation4 + $0x28] sm:$0xff]  ;;  %v625_v18 = vmov 5   ;;  %v626_v22 = vmov 6   ;;  %v627_v26 = vmov 7  }
  0x29   :  { %83 = vperm.xlu1 %534, %v80_v3   ;;  %63 = vperm.xlu0 %532, %v80_v3   ;;  %v472_v9 = vpack.c.bf16 %v145_v8, %v144_v7  ;;  %v475_v14 = vpack.c.bf16 %v147_v13, %v146_v12  ;;  %v148_v15 = vld [vmem:[#allocation4 + $0x30] sm:$0xff]  ;;  %v149_v16 = vld [vmem:[#allocation4 + $0x38] sm:$0xff]  ;;  %v150_v20 = vld [vmem:[#allocation4 + $0x40] sm:$0xff]  ;;  %vm628_vm0 = vmmov 0   ;;  %v629_v33 = vmov 0.0   ;;  %s630_s22 = smov [#allocation9]  }
  0x2a   :  { %470 = vmatpush3.bf16.msra.mxu0 %v469_v6  ;;  %v478_v19 = vpack.c.bf16 %v149_v16, %v148_v15  ;;  %v151_v21 = vld [vmem:[#allocation4 + $0x48] sm:$0xff]  ;;  %v152_v24 = vld [vmem:[#allocation4 + $0x50] sm:$0xff]  ;;  %v153_v25 = vld [vmem:[#allocation4 + $0x58] sm:$0xff]  ;;  %430 = vmatprep.mubr.msk.f32.mxu0 %vm628_vm0, %v629_v33  ;;  %v56_v62 = vand.u32 127, %v55_v59  ;;  %s345_s23 = sshll.u32 %s630_s22, 4  ;;  %s346_s23 = int_to_ptr.vmem [resolvable:$true] %s345_s23 }
  0x2b   :  { %471 = vmatprep.subr.bf16.mxu0 %v621_v2  ;;  %v481_v23 = vpack.c.bf16 %v151_v21, %v150_v20  ;;  %v484_v27 = vpack.c.bf16 %v153_v25, %v152_v24  ;;  %v154_v28 = vld [vmem:[#allocation4 + $0x60] sm:$0xff]  ;;  %v155_v29 = vld [vmem:[#allocation4 + $0x68] sm:$0xff]  ;;  %v156_v31 = vld [vmem:[#allocation4 + $0x70] sm:$0xff]  ;;  %465 = vmatprep.mubr.msk.f32.mxu1 %vm628_vm0, %v629_v33  ;;  %p592_p3 = scmp.lt.s32.totalorder %s346_s23, %s346_s23 }
  0x2c   :  { %v487_v30 = vpack.c.bf16 %v155_v29, %v154_v28  ;;  %v157_v32 = vld [vmem:[#allocation4 + $0x78] sm:$0xff]  ;;  %v234_v34 = vld [vmem:[#allocation7] sm:$0xff]  ;;  %v235_v35 = vld [vmem:[#allocation7 + $0x8] sm:$0xff] }
  0x2d   :  { %535 = vset.pattern.permute.xlu1 %v622_v10  ;;  %533 = vset.pattern.permute.xlu0 %v623_v11  ;;  %v236_v36 = vld [vmem:[#allocation7 + $0x10] sm:$0xff]  ;;  %v493_v37 = vpack.c.bf16 %v235_v35, %v234_v34  ;;  %v237_v38 = vld [vmem:[#allocation7 + $0x18] sm:$0xff]  ;;  %v490_v39 = vpack.c.bf16 %v157_v32, %v156_v31  ;;  %v238_v41 = vld [vmem:[#allocation7 + $0x20] sm:$0xff] }
  0x2e   :  { %93 = vperm.xlu1 %535, %v80_v3   ;;  %73 = vperm.xlu0 %533, %v80_v3   ;;  %v496_v40 = vpack.c.bf16 %v237_v38, %v236_v36  ;;  %v239_v42 = vld [vmem:[#allocation7 + $0x28] sm:$0xff]  ;;  %v240_v44 = vld [vmem:[#allocation7 + $0x30] sm:$0xff]  ;;  %v241_v45 = vld [vmem:[#allocation7 + $0x38] sm:$0xff] }
  0x2f   :  { %473 = vmatpush3.bf16.msra.mxu0 %v472_v9  ;;  %494 = vmatpush3.bf16.msra.mxu1 %v493_v37  ;;  %v499_v43 = vpack.c.bf16 %v239_v42, %v238_v41  ;;  %v502_v46 = vpack.c.bf16 %v241_v45, %v240_v44  ;;  %v242_v47 = vld [vmem:[#allocation7 + $0x40] sm:$0xff]  ;;  %v243_v48 = vld [vmem:[#allocation7 + $0x48] sm:$0xff]  ;;  %v244_v50 = vld [vmem:[#allocation7 + $0x50] sm:$0xff] }
  0x30   :  { %474 = vmatprep.subr.bf16.mxu0 %v621_v2  ;;  %495 = vmatprep.subr.bf16.mxu1 %v621_v2  ;;  %v505_v49 = vpack.c.bf16 %v243_v48, %v242_v47  ;;  %v245_v51 = vld [vmem:[#allocation7 + $0x58] sm:$0xff]  ;;  %v246_v53 = vld [vmem:[#allocation7 + $0x60] sm:$0xff]  ;;  %v247_v54 = vld [vmem:[#allocation7 + $0x68] sm:$0xff] }
  0x31   :  { %v508_v52 = vpack.c.bf16 %v245_v51, %v244_v50  ;;  %v511_v55 = vpack.c.bf16 %v247_v54, %v246_v53  ;;  %v248_v56 = vld [vmem:[#allocation7 + $0x70] sm:$0xff]  ;;  %v249_v57 = vld [vmem:[#allocation7 + $0x78] sm:$0xff]  ;;  %v320_v20 = vld [vmem:[%s733_s1] sm:$0xff]  ;;  %s587_s1 = scalar_lea.vmem %s346_s23, 128 }
  0x32   :  { %536 = vset.pattern.permute.xlu1 %v624_v17  ;;  %537 = vset.pattern.permute.xlu0 %v625_v18  ;;  %v514_v58 = vpack.c.bf16 %v249_v57, %v248_v56  ;;  %v321_v21 = vcvt.s32.f32 %v320_v20  ;;  %p588_p2 = scmp.ne.s32.totalorder %s346_s23, %s587_s1  ;;  %p593_p4 = scmp.lt.s32.totalorder %s587_s1, %s587_s1 }
  0x33   :  { %103 = vperm.xlu1 %536, %v80_v3   ;;  %113 = vperm.xlu0 %537, %v80_v3  }
  0x34   :  { %476 = vmatpush3.bf16.msra.mxu0 %v475_v14  ;;  %497 = vmatpush3.bf16.msra.mxu1 %v496_v40  ;;  %541 = vrcp.f32 %v321_v21  ;;  %p594_p5 = por %p593_p4, %p592_p3 }
  0x35   :  { %477 = vmatprep.subr.bf16.mxu0 %v621_v2  ;;  %498 = vmatprep.subr.bf16.mxu1 %v621_v2 }
  0x36   :  { %p595_p6 = pnand %p594_p5, %p588_p2 }
  0x37   :  { %538 = vset.pattern.permute.xlu1 %v626_v22  ;;  %540 = vset.pattern.permute.xlu0 %v620_v1 }
  0x38   :  { %123 = vperm.xlu1 %538, %v80_v3   ;;  %479 = vmatpush3.bf16.msra.mxu0 %v478_v19 }
  0x39   :  { %480 = vmatprep.subr.bf16.mxu0 %v621_v2  ;;  %500 = vmatpush3.bf16.msra.mxu1 %v499_v43 }
  0x3a   :  { %501 = vmatprep.subr.bf16.mxu1 %v621_v2 }
  0x3c   :  { %539 = vset.pattern.permute.xlu1 %v627_v26  ;;  %482 = vmatpush3.bf16.msra.mxu0 %v481_v23 }
  0x3d   :  { %133 = vperm.xlu1 %539, %v80_v3   ;;  %483 = vmatprep.subr.bf16.mxu0 %v621_v2 }
  0x3e   :  { %503 = vmatpush3.bf16.msra.mxu1 %v502_v46  ;;  %v542_v22 = vpop.eup %541 }
  0x3f   :  { %504 = vmatprep.subr.bf16.mxu1 %v621_v2  ;;  %326 = vperm.xlu0 %540, %v542_v22  }
  0x40   :  { %485 = vmatpush3.bf16.msra.mxu0 %v484_v27  ;;  %v363_v27 = vld [vmem:[%s736_s4] ss:$0 sm:$0xff] }
  0x41   :  { %486 = vmatprep.subr.bf16.mxu0 %v621_v2 }
  0x42   :  { %506 = vmatpush3.bf16.msra.mxu1 %v505_v49 }
  0x43   :  { %507 = vmatprep.subr.bf16.mxu1 %v621_v2 }
  0x44   :  { %488 = vmatpush3.bf16.msra.mxu0 %v487_v30 }
  0x45   :  { %489 = vmatprep.subr.bf16.mxu0 %v621_v2 }
  0x46   :  { %509 = vmatpush3.bf16.msra.mxu1 %v508_v52 }
  0x47   :  { %510 = vmatprep.subr.bf16.mxu1 %v621_v2 }
  0x48   :  { %491 = vmatpush3.bf16.msra.mxu0 %v490_v39 }
  0x4a   :  { %512 = vmatpush3.bf16.msra.mxu1 %v511_v55 }
  0x4b   :  { %513 = vmatprep.subr.bf16.mxu1 %v621_v2 }
  0x4e   :  { %515 = vmatpush3.bf16.msra.mxu1 %v514_v58 }
  0xa8   :  { %v84_v60 = vpop.permute.xlu1 %83  ;;  %v64_v61 = vpop.permute.xlu0 %63 }
  0xa9   :  { %vm65_vm1 = vcmp.eq.s32.totalorder %v64_v61, %v56_v62  ;;  %vm85_vm2 = vcmp.eq.s32.totalorder %v84_v60, %v56_v62 }
  0xaa   :  { %v355_v1 = vsel %vm65_vm1, 1.0, %v629_v33  ;;  %v357_v5 = vsel %vm85_vm2, 1.0, %v629_v33 }
  0xad   :  { %v94_v63 = vpop.permute.xlu1 %93  ;;  %v74_v0 = vpop.permute.xlu0 %73 }
  0xae   :  { %vm75_vm3 = vcmp.eq.s32.totalorder %v74_v0, %v56_v62  ;;  %vm95_vm4 = vcmp.eq.s32.totalorder %v94_v63, %v56_v62 }
  0xaf   :  { %v356_v3 = vsel %vm75_vm3, 1.0, %v629_v33  ;;  %v358_v8 = vsel %vm95_vm4, 1.0, %v629_v33 }
  0xb0   :  { %v78_v4 = vadd.f32 %v356_v3, %v355_v1 }
  0xb2   :  { %v88_v6 = vadd.f32 %v357_v5, %v78_v4  ;;  %v104_v2 = vpop.permute.xlu1 %103  ;;  %v114_v7 = vpop.permute.xlu0 %113 }
  0xb3   :  { %vm105_vm5 = vcmp.eq.s32.totalorder %v104_v2, %v56_v62  ;;  %vm115_vm6 = vcmp.eq.s32.totalorder %v114_v7, %v56_v62 }
  0xb4   :  { %v98_v9 = vadd.f32 %v358_v8, %v88_v6  ;;  %v359_v10 = vsel %vm105_vm5, 1.0, %v629_v33  ;;  %v360_v12 = vsel %vm115_vm6, 1.0, %v629_v33 }
  0xb6   :  { %v108_v11 = vadd.f32 %v359_v10, %v98_v9 }
  0xb7   :  { %v124_v13 = vpop.permute.xlu1 %123 }
  0xb8   :  { %vm125_vm7 = vcmp.eq.s32.totalorder %v124_v13, %v56_v62  ;;  %v118_v14 = vadd.f32 %v360_v12, %v108_v11 }
  0xb9   :  { %v361_v15 = vsel %vm125_vm7, 1.0, %v629_v33 }
  0xba   :  { %v128_v17 = vadd.f32 %v361_v15, %v118_v14 }
  0xbc   :  { %v134_v16 = vpop.permute.xlu1 %133 }
  0xbd   :  { %vm135_vm8 = vcmp.eq.s32.totalorder %v134_v16, %v56_v62 }
  0xbe   :  { %v362_v18 = vsel %vm135_vm8, 1.0, %v629_v33  ;;  %v327_v25 = vpop.permute.xlu0 %326 }
  0xbf   :  { %v138_v19 = vadd.f32 %v362_v18, %v128_v17 }
  0xc1   :  { %431 = vmatmul.mubr.f32.vlgmr.msra.gmra.mrb[0].mxu0 %v138_v19 }
 0x194   :  { %v224_v23 = vpop.f32.mrb[0].mxu0 }
 0x195   :  { %v432_v24 = vpop.f32.mrb[1].mxu0  ;;  %466 = vmatmul.mubr.f32.vlgmr.msra.gmra.mrb[0].mxu1 %v224_v23 }
 0x268   :  { %v316_v26 = vpop.f32.mrb[0].mxu1 }
 0x269   :  { %v329_v28 = vmul.f32 %v327_v25, %v316_v26  ;;  %v467_v29 = vpop.f32.mrb[1].mxu1 }
 0x26b   :  { %v337_v30 = vadd.f32 %v363_v27, %v329_v28 }
 0x26d   :  { %338 = vst [vmem:[#allocation9] sm:$0xff] %v337_v30 }
 0x26e   :  { %598 = shalt.err (!%p595_p6)
}
 0x26f   :  { %s599_s26 = scalar_lea.hbm %s737_s5, 128 }
 0x270   :  { %p600_p7 = scmp.ne.s32.totalorder %s737_s5, %s599_s26  ;;  %p603_p8 = scmp.lt.u32.totalorder %s599_s26, %s737_s5 }
 0x272   :  { %p605_p9 = pnand %p603_p8, %p600_p7 }
 0x274   :  { %608 = shalt.err (!%p605_p9)
}
 0x275   :  { %348 = dma.vmem_to_hbm [thread:$0]  %s346_s23, 128, %s737_s5, [#allocation6]  }
 0x276   :  { %613 = dma.done.wait [#allocation6], 128  }
 0x277   :  { %614 = vsyncadd [#allocation6], 4294967168 }
 0x278   :  { %352 = vsyncpa [#allocation5], 1 }
 0x279   :  { %353 = vsyncpa [#allocation8], 1 }
 0x27a   :  { %354 = vsyncpa [#allocation6], 1 }

</bundles_post_ra>
